<compile_context>
chip_gen: v6e
topology: v6e:2x2x1
jax: 0.10.0
libtpu: 0.0.40
codegen_flags: <defaults>
</compile_context>

<pallas_src>
import functools
import math

import jax
import jax.numpy as jnp
import numpy as np
from jax.experimental import pallas as pl
from jax.experimental.pallas import tpu as pltpu


# ----------------------------------------------------------------------------
# Fused kernel.  One grid step = one batch element.
#   ctx_ref : (C, D)  context features (same block every step -> fetched once)
#   x_ref   : (C, D)  node features of batch element b (batch dim squeezed)
#   o_ref   : (C, D)  output for batch element b
#   a_ref   : (C, C)  VMEM scratch: A' = normalize(edges) + I, built at b == 0
# ----------------------------------------------------------------------------
def _fused_graph_kernel(ctx_ref, x_ref, o_ref, a_ref, *, compute_dtype):
    b = pl.program_id(0)

    @pl.when(b == 0)
    def _build_adjacency():
        ctx = ctx_ref[...]  # (C, D) f32

        # F.normalize(p=2, dim=1): x / max(||x||, 1e-12) == x * rsqrt(max(ss, 1e-24)).
        # rsqrt goes to the EUP (free VLIW slot).
        sumsq = jnp.sum(ctx * ctx, axis=-1, keepdims=True)
        ctxn = ctx * jax.lax.rsqrt(jnp.maximum(sumsq, 1e-24))

        # context_sim = ctxn @ ctxn.T without materializing the transpose.
        ctxn_c = ctxn.astype(compute_dtype)
        sim = jax.lax.dot_general(
            ctxn_c, ctxn_c,
            dimension_numbers=(((1,), (1,)), ((), ())),
            preferred_element_type=jnp.float32,
        )  # (C, C)

        C = sim.shape[0]
        ii = jax.lax.broadcasted_iota(jnp.int32, (C, C), 0)
        jj = jax.lax.broadcasted_iota(jnp.int32, (C, C), 1)
        diag = ii == jj

        # Zero-co-occurrence fallback: edge = 0.1 * sim off-diagonal (0 on the
        # diagonal), then normalized by its max.  Since max(0.1*s) = 0.1*max(s)
        # the 0.1 cancels when the max is positive:
        #   mx > 0 : A = s / mx        (scale = 1/mx, exact scalar divide)
        #   mx <= 0: A = 0.1 * s       (unnormalized)
        # Residual folded in: A' = A + I.
        s = jnp.where(diag, 0.0, sim)
        mx = jnp.max(s)
        scale = jnp.where(mx > 0.0, 1.0 / jnp.maximum(mx, 1e-30), 0.1)
        a_ref[...] = jnp.where(diag, 1.0, s * scale)

    # out_b = A' @ x_b   (residual already folded into A').
    o_ref[...] = jnp.dot(
        a_ref[...].astype(compute_dtype),
        x_ref[...].astype(compute_dtype),
        preferred_element_type=jnp.float32,
    ).astype(o_ref.dtype)


# ----------------------------------------------------------------------------
# Wrapper: one fused pallas_call over grid=(B,).  No HBM-level transposes.
# ----------------------------------------------------------------------------
def visual_feature_graph_forward(
    context_features: jax.Array,
    x: jax.Array,
    *,
    compute_dtype=jnp.float32,  # set jnp.bfloat16 for scaled-up C/D configs
) -> jax.Array:
    B, C, D = x.shape
    ctx = context_features.astype(jnp.float32)
    x32 = x.astype(jnp.float32)

    cost = pl.CostEstimate(
        flops=2 * C * C * D + 2 * B * C * C * D,   # sim build + B propagations
        transcendentals=C,                          # per-row rsqrt
        bytes_accessed=4 * (C * D + 2 * B * C * D),
    )

    kernel = functools.partial(_fused_graph_kernel, compute_dtype=compute_dtype)

    out = pl.pallas_call(
        kernel,
        out_shape=jax.ShapeDtypeStruct((B, C, D), jnp.float32),
        grid_spec=pltpu.PrefetchScalarGridSpec(
            num_scalar_prefetch=0,
            grid=(B,),
            in_specs=[
                # context features: same block every step -> DMA'd once.
                pl.BlockSpec((C, D), lambda b: (0, 0),
                             memory_space=pltpu.MemorySpace.VMEM),
                # node features: batch dim squeezed, one (C, D) slab per step.
                pl.BlockSpec((None, C, D), lambda b: (b, 0, 0),
                             memory_space=pltpu.MemorySpace.VMEM),
            ],
            out_specs=pl.BlockSpec((None, C, D), lambda b: (b, 0, 0),
                                   memory_space=pltpu.MemorySpace.VMEM),
            scratch_shapes=[pltpu.VMEM((C, C), jnp.float32)],
        ),
        compiler_params=pltpu.CompilerParams(
            # "arbitrary": the A' scratch is built at b == 0 and carried across
            # the batch grid, so steps must run in order on one core.
            dimension_semantics=("arbitrary",),
            vmem_limit_bytes=32 * 1024 * 1024,
        ),
        cost_estimate=cost,
    )(ctx, x32)

    return out.astype(x.dtype)


# ----------------------------------------------------------------------------
# Parameter init (deterministic, matches nn.init.xavier_uniform_ shapes)
# ----------------------------------------------------------------------------
def init_params(key, num_classes: int, feature_dim: int):
    k1, k2, k3, k4 = jax.random.split(key, 4)
    bound = math.sqrt(6.0 / (num_classes + feature_dim))
    class_features = jax.random.uniform(
        k1, (num_classes, feature_dim), jnp.float32, -bound, bound)
    context_features = jax.random.uniform(
        k2, (num_classes, feature_dim), jnp.float32, -bound, bound)
    # sim_proj params (unused on the zero-co-occurrence forward path; parity only)
    h = feature_dim // 2
    b1 = math.sqrt(1.0 / feature_dim)
    b2 = math.sqrt(1.0 / max(h, 1))
    sim_proj = {
        "w1": jax.random.uniform(k3, (h, feature_dim), jnp.float32, -b1, b1),
        "b1": jnp.zeros((h,), jnp.float32),
        "w2": jax.random.uniform(k4, (1, h), jnp.float32, -b2, b2),
        "b2": jnp.zeros((1,), jnp.float32),
    }
    return class_features, context_features, sim_proj


# ----------------------------------------------------------------------------
# float64 numpy reference (mirrors the PyTorch module exactly for the
# freshly-initialized-buffers path).
# ----------------------------------------------------------------------------
def _reference_forward(context_features, x):
    ctx = np.asarray(context_features, dtype=np.float64)
    xx = np.asarray(x, dtype=np.float64)
    norm = np.linalg.norm(ctx, axis=-1, keepdims=True)
    ctxn = ctx / np.maximum(norm, 1e-12)
    sim = ctxn @ ctxn.T
    C = sim.shape[0]
    edge = 0.1 * sim * (1.0 - np.eye(C))
    mx = edge.max()
    if mx > 0:
        edge = edge / mx
    return xx + np.einsum("ij,bjd->bid", edge, xx)


if __name__ == "__main__":
    num_classes = 8
    feature_dim = 128   # lane-aligned last dim -> unmasked vector stores
    batch = 2

    key = jax.random.PRNGKey(0)
    kp, kx = jax.random.split(key)
    class_features, context_features, sim_proj = init_params(kp, num_classes, feature_dim)

    x = jax.random.normal(kx, (batch, num_classes, feature_dim), jnp.float32)

    # build_graph() + forward() equivalent, fused into a single Pallas kernel.
    out = visual_feature_graph_forward(context_features, x)
    out = jax.block_until_ready(out)

    ref = _reference_forward(context_features, x)
    assert out.shape == x.shape and out.dtype == x.dtype
    assert np.allclose(np.asarray(out), ref, atol=1e-5, rtol=1e-5), "mismatch vs reference"

    print("KERNEL_OK")
</pallas_src>

<mosaic_0001>
module attributes {stable_mosaic.version = 11 : i64} {
  func.func @_fused_graph_kernel(%arg0: i32, %arg1: memref<8x128xf32, #tpu.memory_space<vmem>>, %arg2: memref<1x8x128xf32, #tpu.memory_space<vmem>>, %arg3: memref<1x8x128xf32, #tpu.memory_space<vmem>>, %arg4: memref<8x8xf32, #tpu.memory_space<vmem>>) attributes {dimension_semantics = [#tpu.dimension_semantics<arbitrary>], iteration_bounds = array<i64: 2>, scalar_prefetch = 0 : i64, scratch_operands = 1 : i64, tpu.core_type = #tpu.core_type<tc>, window_params = [{pipeline_mode = #tpu.pipeline_mode<synchronous>, transform_indices = @transform_0, window_bounds = array<i64: 8, 128>}, {transform_indices = @transform_1, window_bounds = array<i64: 1, 8, 128>}, {transform_indices = @transform_2, window_bounds = array<i64: 1, 8, 128>}]} {
    %c0_i32 = arith.constant 0 : i32
    %0 = arith.cmpi eq, %arg0, %c0_i32 : i32
    %1 = arith.extui %0 : i1 to i32
    %c0_i32_0 = arith.constant 0 : i32
    %2 = arith.cmpi ne, %1, %c0_i32_0 : i32
    scf.if %2 {
      %c0_8 = arith.constant 0 : index
      %c0_9 = arith.constant 0 : index
      %10 = vector.load %arg1[%c0_8, %c0_9] : memref<8x128xf32, #tpu.memory_space<vmem>>, vector<8x128xf32>
      %11 = arith.mulf %10, %10 : vector<8x128xf32>
      %cst_10 = arith.constant dense<0.000000e+00> : vector<8xf32>
      %12 = vector.multi_reduction <add>, %11, %cst_10 [1] : vector<8x128xf32> to vector<8xf32>
      %13 = vector.shape_cast %12 : vector<8xf32> to vector<8x1xf32>
      %cst_11 = arith.constant 1.000000e-24 : f32
      %14 = vector.broadcast %cst_11 : f32 to vector<8x1xf32>
      %15 = arith.maximumf %13, %14 : vector<8x1xf32>
      %16 = math.rsqrt %15 : vector<8x1xf32>
      %17 = vector.broadcast %16 : vector<8x1xf32> to vector<8x128xf32>
      %18 = arith.mulf %10, %17 : vector<8x128xf32>
      %cst_12 = arith.constant dense<0.000000e+00> : vector<8x8xf32>
      %19 = tpu.matmul %18, %18, %cst_12 {dimension_numbers = #tpu.dot_dimension_numbers<[1], [1], [0], [0], [0, 0, 1, 0], [], []>} : vector<8x128xf32>, vector<8x128xf32>, vector<8x8xf32> -> vector<8x8xf32>
      %20 = tpu.iota {dimensions = array<i32: 0>} : vector<8x8xi32>
      %21 = tpu.iota {dimensions = array<i32: 1>} : vector<8x8xi32>
      %22 = arith.cmpi eq, %20, %21 : vector<8x8xi32>
      %cst_13 = arith.constant 0.000000e+00 : f32
      %23 = vector.broadcast %cst_13 : f32 to vector<8x8xf32>
      %24 = arith.select %22, %23, %19 : vector<8x8xi1>, vector<8x8xf32>
      %25 = vector.shape_cast %24 : vector<8x8xf32> to vector<1x8x8xf32>
      %cst_14 = arith.constant dense<0xFF800000> : vector<1xf32>
      %26 = vector.multi_reduction <maximumf>, %25, %cst_14 [1, 2] : vector<1x8x8xf32> to vector<1xf32>
      %27 = vector.shape_cast %26 : vector<1xf32> to vector<1x1x1xf32>
      %28 = vector.extract %27[0, 0, 0] : f32 from vector<1x1x1xf32>
      %cst_15 = arith.constant 0.000000e+00 : f32
      %29 = arith.cmpf ogt, %28, %cst_15 : f32
      %cst_16 = arith.constant 1.000000e-30 : f32
      %30 = arith.maximumf %28, %cst_16 : f32
      %cst_17 = arith.constant 1.000000e+00 : f32
      %31 = arith.divf %cst_17, %30 : f32
      %cst_18 = arith.constant 1.000000e-01 : f32
      %32 = arith.select %29, %31, %cst_18 : f32
      %33 = vector.broadcast %32 : f32 to vector<8x8xf32>
      %34 = arith.mulf %24, %33 : vector<8x8xf32>
      %cst_19 = arith.constant 1.000000e+00 : f32
      %35 = vector.broadcast %cst_19 : f32 to vector<8x8xf32>
      %36 = arith.select %22, %35, %34 : vector<8x8xi1>, vector<8x8xf32>
      %c0_20 = arith.constant 0 : index
      %c0_21 = arith.constant 0 : index
      %37 = vector.load %arg4[%c0_20, %c0_21] : memref<8x8xf32, #tpu.memory_space<vmem>>, vector<8x8xf32>
      tpu.vector_store %arg4[%c0_20, %c0_21], %36 {strides = array<i32>} : memref<8x8xf32, #tpu.memory_space<vmem>>, vector<8x8xf32>,
    } else {
    }
    %c0 = arith.constant 0 : index
    %c0_1 = arith.constant 0 : index
    %3 = vector.load %arg4[%c0, %c0_1] : memref<8x8xf32, #tpu.memory_space<vmem>>, vector<8x8xf32>
    %c0_2 = arith.constant 0 : index
    %c0_3 = arith.constant 0 : index
    %c0_4 = arith.constant 0 : index
    %4 = vector.load %arg2[%c0_2, %c0_3, %c0_4] : memref<1x8x128xf32, #tpu.memory_space<vmem>>, vector<1x8x128xf32>
    %5 = vector.shape_cast %4 : vector<1x8x128xf32> to vector<8x128xf32>
    %cst = arith.constant dense<0.000000e+00> : vector<8x128xf32>
    %6 = tpu.matmul %3, %5, %cst {dimension_numbers = #tpu.dot_dimension_numbers<[1], [0], [0], [1], [0, 0, 1, 1], [], []>} : vector<8x8xf32>, vector<8x128xf32>, vector<8x128xf32> -> vector<8x128xf32>
    %c0_5 = arith.constant 0 : index
    %c0_6 = arith.constant 0 : index
    %c0_7 = arith.constant 0 : index
    %7 = vector.load %arg3[%c0_5, %c0_6, %c0_7] : memref<1x8x128xf32, #tpu.memory_space<vmem>>, vector<1x8x128xf32>
    %8 = vector.shape_cast %7 : vector<1x8x128xf32> to vector<8x128xf32>
    %9 = vector.shape_cast %6 : vector<8x128xf32> to vector<1x8x128xf32>
    tpu.vector_store %arg3[%c0_5, %c0_6, %c0_7], %9 {strides = array<i32>} : memref<1x8x128xf32, #tpu.memory_space<vmem>>, vector<1x8x128xf32>,
    return
  }
  func.func @transform_0(%arg0: i32) -> (i32, i32) {
    %c0_i32 = arith.constant 0 : i32
    %c0_i32_0 = arith.constant 0 : i32
    %c0_i32_1 = arith.constant 0 : i32
    return %c0_i32, %c0_i32_0 : i32, i32
  }
  func.func @transform_1(%arg0: i32) -> (i32, i32, i32) {
    %c0_i32 = arith.constant 0 : i32
    %c0_i32_0 = arith.constant 0 : i32
    %c0_i32_1 = arith.constant 0 : i32
    return %arg0, %c0_i32, %c0_i32_0 : i32, i32, i32
  }
  func.func @transform_2(%arg0: i32) -> (i32, i32, i32) {
    %c0_i32 = arith.constant 0 : i32
    %c0_i32_0 = arith.constant 0 : i32
    %c0_i32_1 = arith.constant 0 : i32
    return %arg0, %c0_i32, %c0_i32_0 : i32, i32, i32
  }
}

</mosaic_0001>

<bundles_post_ra>
// kernel: tpu_custom_call.1
= control target key start
LH: loop header
LB: loop body
LE: loop exit
PB: predicated region body
PF: predicated region fallthrough
CT: control target
= control target key end

     0   :  { %7 = vsyncpa [#allocation4], 0  ;;  %s892_s0 = inlined_call_operand.hbm [shape: f32[8,128], index: 0, kind: input, shape index: {}]   ;;  %s893_s1 = inlined_call_operand.hbm [shape: f32[2,8,128], index: 1, kind: input, shape index: {}]   ;;  %s894_s2 = inlined_call_operand.hbm [shape: f32[2,8,128], index: 2, kind: output, shape index: {}]  }
   0x1   :  { %8 = vsyncpa [#allocation7], 0 }
   0x2   :  { %10 = vsyncpa [#allocation7 + $0x1], 0 }
   0x3   :  { %11 = vsyncpa [#allocation5], 0 }
   0x4   :  { %13 = vsyncpa [#allocation5 + $0x1], 0  ;;  %s700_s9 = smov 0   ;;  %s702_s10 = smov 0  }
   0x5   :  { %s704_s11 = smov 0   ;;  %s706_s12 = smov 0  }
   0x6 LB: > { %s721_s13 = sadd.s32 4294967295, %s675_s12   ;;  %s453_s14 = sadd.s32 4294967294, %s675_s12   ;;  %s675_s12 = sphi %s706_s12, %s918_s12   ;;  %s671_s11 = sphi %s704_s11, %s917_s11   ;;  %s667_s10 = sphi %s702_s10, %s916_s10   ;;  %s663_s9 = sphi %s700_s9, %s915_s9  }
   0x7   : > { %p60_p0 = scmp.ne.s32.totalorder %s667_s10, %s663_s9  ;;  %p895_p1 = scmp.eq.s32.totalorder %s721_s13, 0 }
   0x8   : > { %p90_p3 = scmp.eq.s32.totalorder %s453_s14, 1  ;;  %p454_p5 = scmp.ge.s32.totalorder %s675_s12, 1 }
   0x9   : > { %p730_p4 = por %p895_p1, %p60_p0  ;;  %p97_p7 = scmp.lt.s32.totalorder %s675_s12, 3 }
   0xa   : > { %p735_p6 = por %p90_p3, %p60_p0  ;;  %s677_s18 = smov [#allocation3]  }
   0xb   : > { %s899_s15 = scalar_select %p730_p4, 1, 0 }
   0xc   : > { %s900_s16 = scalar_select %p735_p6, 1, 0 }
   0xd   : > { %p741_p9 = pnand %p454_p5, %p97_p7  ;;  %s110_s19 = sshll.u32 %s677_s18, 4  ;;  %s111_s19 = int_to_ptr.vmem [resolvable:$true] %s110_s19 }
   0xe   : > { %s749_s20 = sadd.s32 1, %s675_s12   ;;  %s47_s24 = sadd.s32 1, %s671_s11 }
   0xf   : > { %s901_s17 = scalar_select %p741_p9, 1, 0 }
  0x10   : > { %p495_p11 = pneg %p741_p9  ;;  %s44_s22 = ssub.s32 %s675_s12, %s749_s20 }
  0x11   : > { %p759_p13 = scmp.eq.s32.totalorder %s44_s22, 0  ;;  %p54_p0 = scmp.ne.s32.totalorder %s671_s11, %s667_s10 }
  0x12   : > { %p753_p12 = pnand %p495_p11, %p895_p1  ;;  %s564_s25 = scalar_lea.vmem %s111_s19, 128 }
  0x13   : > { %p565_p5 = scmp.ne.s32.totalorder %s111_s19, %s564_s25  ;;  %p572_p8 = scmp.lt.s32.totalorder %s111_s19, %s111_s19 }
  0x14   : > { %p555_p3 = pneg %p753_p12  ;;  %p573_p2 = scmp.lt.s32.totalorder %s564_s25, %s564_s25 }
  0x16   : > { %p567_p7 = pnand %p565_p5, %p555_p3  ;;  %p574_p11 = por %p573_p2, %p572_p8 }
  0x18   : > { %p568_p10 = pneg %p567_p7 }
  0x1a   : > { %p575_p1 = pnand %p574_p11, %p568_p10 }
  0x1c   : > { %578 = shalt.err (!%p575_p1)
}
  0x1d   : > { %498 = dma.hbm_to_vmem [thread:$0]  (!%p753_p12), %s892_s0, 128, %s111_s19, [#allocation4]  }
  0x1e   : > { %s776_s28 = scalar_select %p759_p13, %s671_s11, %s47_s24  }
  0x1f   : > { %p55_p1 = scmp.eq.s32.totalorder %s675_s12, 0  ;;  %p904_p2 = scmp.eq.s32.totalorder %s721_s13, 1 }
  0x20   : > { %p508_p10 = scmp.lt.s32.totalorder %s675_s12, 2  ;;  %s121_s30 = sand.u32 1, %s671_s11  }
  0x21   : > { %p784_p8 = por %p904_p2, %p54_p0  ;;  %p56_p3 = por %p55_p1, %p54_p0 }
  0x22   : > { %s457_s3 = sshll.u32 %s121_s30, 3  ;;  %s458_s4 = sshll.u32 %s675_s12, 7 }
  0x23   : > { %s905_s29 = scalar_select %p784_p8, 1, 0 }
  0x24   : > { %s797_s7 = scalar_lea.hbm %s893_s1, %s458_s4  ;;  %s125_s8 = scalar_lea.vmem [#allocation6], %s457_s3 }
  0x25   : > { %s132_s14 = sshll.u32 %s125_s8, 4  ;;  %p799_p12 = pnand %p508_p10, %p56_p3  ;;  %s133_s14 = int_to_ptr.vmem [resolvable:$true] %s132_s14 }
  0x26   : > { %s122_s19 = scalar_lea.sflag [#allocation7], %s121_s30  ;;  %s579_s21 = scalar_lea.hbm %s797_s7, 128 }
  0x27   : > { %p580_p13 = scmp.ne.s32.totalorder %s797_s7, %s579_s21  ;;  %p581_p0 = pneg %p799_p12 }
  0x28   : > { %s584_s24 = scalar_lea.hbm %s893_s1, 256  ;;  %p585_p11 = scmp.lt.s32.totalorder %s797_s7, %s893_s1 }
  0x29   : > { %p582_p5 = pnand %p581_p0, %p580_p13  ;;  %p586_p1 = scmp.lt.s32.totalorder %s584_s24, %s579_s21 }
  0x2b   : > { %p583_p7 = pneg %p582_p5  ;;  %p587_p2 = por %p586_p1, %p585_p11 }
  0x2d   : > { %p588_p10 = pnand %p587_p2, %p583_p7 }
  0x2f   : > { %591 = shalt.err (!%p588_p10)
}
  0x30   : > { %s592_s27 = scalar_lea.vmem %s133_s14, 128  ;;  %s678_s30 = smov [#allocation6]  }
  0x31   : > { %p593_p3 = scmp.ne.s32.totalorder %s133_s14, %s592_s27  ;;  %s597_s3 = sshll.u32 %s678_s30, 4  ;;  %s598_s3 = int_to_ptr.vmem [resolvable:$false] %s597_s3 }
  0x32   : > { %s599_s4 = scalar_lea.vmem %s598_s3, 256  ;;  %p600_p13 = scmp.lt.s32.totalorder %s133_s14, %s598_s3 }
  0x33   : > { %p595_p6 = pnand %p593_p3, %p581_p0  ;;  %p601_p5 = scmp.lt.s32.totalorder %s599_s4, %s592_s27 }
  0x35   : > { %p596_p8 = pneg %p595_p6  ;;  %p602_p4 = por %p601_p5, %p600_p13 }
  0x37   : > { %p603_p9 = pnand %p602_p4, %p596_p8 }
  0x39   : > { %606 = shalt.err (!%p603_p9)
}
  0x3a   : > { %502 = dma.hbm_to_vmem [thread:$0]  (!%p799_p12), %s797_s7, 128, %s133_s14, %s122_s19  }
  0x3b   : > { %p907_p7 = scmp.ne.s32.totalorder %s901_s17, 0 }
  0x3c   : > { %p908_p11 = scmp.eq.s32.totalorder (!%p907_p7), %s721_s13, 0 }
  0x3d   : > { %141 = sbr.rel (%p907_p7) target bundleno = 921 (0x399), region = 28 }
  0x42   : > { %650 = dma.done.wait (%p908_p11), [#allocation4], 128   ;;  %p909_p6 = pmov %p908_p11 }
  0x43   : > { %s824_s5 = sand.u32 1, %s667_s10   ;;  %p910_p4 = scmp.ne.s32.totalorder %s899_s15, 0 }
  0x44   : > { %652 = vsyncadd (%p909_p6), [#allocation4], 4294967168  ;;  %s461_s6 = sshll.u32 %s824_s5, 3  ;;  %s148_s8 = scalar_lea.sflag [#allocation7], %s824_s5 }
  0x45   : > { %s828_s18 = scalar_lea.vmem [#allocation6], %s461_s6 }
  0x46   : > { %654 = dma.done.wait (%p910_p4), %s148_s8, 128  }
  0x47   : > { %656 = vsyncadd (%p910_p4), %s148_s8, 4294967168  ;;  %s834_s17 = scalar_lea.vmem [#allocation8], %s461_s6  ;;  %p911_p9 = scmp.ne.s32.totalorder %s721_s13, 0 }
  0x48   : > { %s681_s7 = smov (!%p911_p9), 1e-30  }
  0x49   : > { %175 = sbr.rel (%p911_p9) target bundleno = 707 (0x2c3), region = 40 }
  0x4e   : > { %v176_v0 = vld [vmem:[#allocation3] sm:$0xff]  ;;  %v679_v2 = vmov 0.0   ;;  %vm680_vm0 = vmmov 0   ;;  %v253_v7 = vlaneseq  ;;  %vm259_vm2 = vcmask 64512  }
  0x4f   : > { %v177_v1 = vmul.f32 %v176_v0, %v176_v0  ;;  %473 = vmatprep.subr.mxu0 %v679_v2  ;;  %475 = vmatprep.mubr.msk.f32.mxu0 %vm680_vm0, %v679_v2 }
  0x50   : > { %v254_v8 = vshrl.u32 %v253_v7, 7  ;;  %v256_v9 = vand.u32 127, %v253_v7 }
  0x51   : > { %178 = vadd.xlane.f32.xlu0 %v177_v1 }
  0x52   : > { %vm257_vm1 = vcmp.eq.s32.totalorder %v254_v8, %v256_v9 }
  0xda   : > { %v179_v3 = vpop.xlane.xlu0 %178 }
  0xdb   : > { %v180_v4 = vmax.f32 %v179_v3, 1e-24 }
  0xdd   : > { %549 = vrsqrt.f32 %v180_v4 }
  0xea   : > { %v550_v5 = vpop.eup %549 }
  0xeb   : > { %v182_v6 = vmul.f32 %v550_v5, %v176_v0 }
  0xed   : > { %474 = vmatpush3.xpose.msra.mxu0 %v182_v6 }
  0xf0   : > { %476 = vmatmul.mubr.f32.vlgmr.msra.gmra.mxu0 %v182_v6 }
 0x1b0   : > { %v249_v10 = vpop.f32.mrf.mxu0 }
 0x1b1   : > { %v258_v11 = vsel %vm257_vm1, 0.0, %v249_v10 }
 0x1b2   : > { %v477_v12 = vpop.f32.mrf.mxu0  ;;  %v260_v13 = vsel %vm259_vm2, %v258_v11, -inf }
 0x1b3   : > { %261 = vmax.xlane.f32.xlu0 %v260_v13 }
 0x23c   : > { %v262_v14 = vpop.xlane.xlu0 %261 }
 0x23d   : > { %v263_v15 = vrot.slane %v262_v14, 4 }
 0x23f   : > { %v264_v16 = vmax.f32 %v262_v14, %v263_v15 }
 0x241   : > { %v265_v17 = vrot.slane %v264_v16, 2 }
 0x243   : > { %v266_v18 = vmax.f32 %v264_v16, %v265_v17 }
 0x245   : > { %v267_v19 = vrot.slane %v266_v18, 1 }
 0x247   : > { %v268_v20 = vmax.f32 %v266_v18, %v267_v19 }
 0x249   : > { %483 = vpush %v268_v20 }
 0x27a   : > { %s484_s15 = spop %483 }
 0x27b   : > { %s271_s14 = smax.f32 %s681_s7, %s484_s15  ;;  %p270_p8 = scmp.gt.f32.partialorder %s484_s15, 0.0 }
 0x27c   : > { %v272_v21 = vstv %s271_s14 }
 0x27d   : > { %551 = vrcp.f32 %v272_v21 }
 0x28a   : > { %v552_v22 = vpop.eup %551 }
 0x28b   : > { %485 = vpush %v552_v22 }
 0x2bc   : > { %s486_s19 = spop %485 }
 0x2bd   : > { %s920_s19 = smov (!%p270_p8, %s486_s19), 0.1 }
 0x2be   : > { %v276_v23 = vstv %s920_s19 }
 0x2bf   : > { %v277_v24 = vmul.f32 %v276_v23, %v258_v11 }
 0x2c1   : > { %v278_v25 = vsel %vm257_vm1, 1.0, %v277_v24 }
 0x2c2   : > { %279 = vst.msk [vmem:[#allocation2] sm:$0xff] %vm259_vm2, %v278_v25 }
 0x2c3 PF: > { %v281_v26 = vld [vmem:[%s828_s18] sm:$0xff]  ;;  %vm282_vm3 = vcmask 64512   ;;  %v682_v28 = vmov 0.0   ;;  %vm683_vm4 = vmmov 0   ;;  %s466_s21 = sshll.u32 %s721_s13, 7  ;;  %s371_s22 = sshll.u32 %s834_s17, 4  ;;  %s850_s22 = int_to_ptr.vmem [resolvable:$true] %s371_s22 }
 0x2c4   : > { %478 = vmatprep.subr.mxu0 %v682_v28  ;;  %480 = vmatprep.mubr.msk.f32.mxu0 %vm683_vm4, %v682_v28  ;;  %s848_s25 = scalar_lea.hbm %s894_s2, %s466_s21  ;;  %s358_s26 = scalar_lea.sflag [#allocation5], %s824_s5 }
 0x2c5   : > { %479 = vmatpush3.msra.mxu0 %v281_v26  ;;  %s607_s27 = scalar_lea.vmem %s850_s22, 128  ;;  %p912_p0 = scmp.ne.s32.totalorder %s905_s29, 0 }
 0x2c6   : > { %p608_p12 = scmp.ne.s32.totalorder %s850_s22, %s607_s27  ;;  %s684_s13 = smov [#allocation8]  }
 0x2c7   : > { %s611_s30 = sshll.u32 %s684_s13, 4  ;;  %s612_s30 = int_to_ptr.vmem [resolvable:$false] %s611_s30 }
 0x2c8   : > { %p609_p1 = pnand %p608_p12, %p912_p0  ;;  %s613_s3 = scalar_lea.vmem %s612_s30, 256 }
 0x2c9   : > { %v280_v27 = vld [vmem:[#allocation2] sm:$0xff]  ;;  %p614_p10 = scmp.lt.s32.totalorder %s850_s22, %s612_s30  ;;  %p615_p3 = scmp.lt.s32.totalorder %s613_s3, %s607_s27 }
 0x2ca   : > { %481 = vmatmul.mubr.msk.f32.vlgmr.msra.gmra.mxu0 %vm282_vm3, %v280_v27  ;;  %p610_p2 = pneg %p609_p1 }
 0x2cb   : > { %p616_p13 = por %p615_p3, %p614_p10 }
 0x2cd   : > { %p617_p5 = pnand %p616_p13, %p610_p2 }
 0x38a   : > { %v352_v29 = vpop.f32.mrf.mxu0 }
 0x38b   : > { %356 = vst [vmem:[%s834_s17] sm:$0xff] %v352_v29 }
 0x38c   : > { %v482_v30 = vpop.f32.mrf.mxu0 }
 0x38d   : > { %620 = shalt.err (!%p617_p5)
}
 0x38e   : > { %s621_s4 = scalar_lea.hbm %s848_s25, 128  ;;  %s625_s8 = scalar_lea.hbm %s894_s2, 256 }
 0x38f   : > { %p622_p7 = scmp.ne.s32.totalorder %s848_s25, %s621_s4  ;;  %p626_p4 = scmp.lt.s32.totalorder %s848_s25, %s894_s2 }
 0x390   : > { %p627_p9 = scmp.lt.s32.totalorder %s625_s8, %s621_s4 }
 0x391   : > { %p623_p11 = pnand %p622_p7, %p912_p0 }
 0x392   : > { %p628_p8 = por %p627_p9, %p626_p4 }
 0x393   : > { %p624_p6 = pneg %p623_p11 }
 0x395   : > { %p629_p12 = pnand %p628_p8, %p624_p6 }
 0x397   : > { %632 = shalt.err (!%p629_p12)
}
 0x398   : > { %493 = dma.vmem_to_hbm [thread:$0]  (%p912_p0), %s850_s22, 128, %s848_s25, %s358_s26  }
 0x399 PF: > { %s383_s15 = sand.u32 1, %s663_s9   ;;  %p913_p1 = scmp.ne.s32.totalorder %s900_s16, 0 }
 0x39a   : > { %p914_p2 = scmp.ge.s32.totalorder %s675_s12, 2  ;;  %s384_s7 = scalar_lea.sflag [#allocation5], %s383_s15 }
 0x39c   : > { %p504_p10 = pnand %p914_p2, %p913_p1 }
 0x39e   : > { %p505_p3 = pneg %p504_p10 }
 0x3a0   : > { %658 = dma.done.wait (%p505_p3), %s384_s7, 128  }
 0x3a1   : > { %660 = vsyncadd (%p505_p3), %s384_s7, 4294967168  ;;  %p16_p13 = scmp.ge.s32.totalorder %s749_s20, 4   ;;  %s915_s9 = smov %s667_s10 }
 0x3a2   : > { %s916_s10 = smov %s671_s11  ;;  %s917_s11 = smov %s776_s28 }
 0x3a3   : > { %s918_s12 = smov %s749_s20  ;;  %18 = sbr.rel (!%p16_p13) target bundleno = 6 (0x6), region = 82 }
 0x3a8   :  { %389 = vsyncpa [#allocation4], 1 }
 0x3a9   :  { %391 = vsyncpa [#allocation4 + $0x1], 1 }
 0x3aa   :  { %392 = vsyncpa [#allocation7], 1 }
 0x3ab   :  { %394 = vsyncpa [#allocation7 + $0x1], 1 }
 0x3ac   :  { %395 = vsyncpa [#allocation5], 1 }
 0x3ad   :  { %397 = vsyncpa [#allocation5 + $0x1], 1 }

</bundles_post_ra>
